<compile_context>
chip_gen: v6e
topology: v6e:2x2x1
jax: 0.10.0
libtpu: 0.0.40
codegen_flags: <defaults>
</compile_context>

<pallas_src>
import functools
import math

import jax
import jax.numpy as jnp
from jax.experimental import pallas as pl
from jax.experimental.pallas import tpu as pltpu

_LANES = 128


def _soft_dice_kernel(logits_ref, targets_ref, out_ref, *, d_valid, needs_mask):
    """One grid step: fold a (TB, r_block, 128) tile of probs/targets into
    three lane-dense partial-sum slabs accumulated in the output block."""
    k = pl.program_id(1)
    tb, r_block, lanes = logits_ref.shape

    @pl.when(k == 0)
    def _():
        out_ref[...] = jnp.zeros(out_ref.shape, out_ref.dtype)

    x = logits_ref[...].astype(jnp.float32)      # (TB, R, 128)
    t = targets_ref[...].astype(jnp.float32)     # (TB, R, 128)
    p = jax.nn.sigmoid(x)                        # probs = sigmoid(logits), EUP

    if needs_mask:
        # Global element index of each (row, lane) position in this chunk.
        # A few VALU ops per vreg — fully hidden under the HBM DMA.
        row = jax.lax.broadcasted_iota(jnp.int32, (r_block, lanes), 0)
        lane = jax.lax.broadcasted_iota(jnp.int32, (r_block, lanes), 1)
        gidx = (k * r_block + row) * lanes + lane
        valid = (gidx < d_valid)[None, :, :]
        # Zero BOTH probs and targets so intersection and both sums are exact.
        p = jnp.where(valid, p, 0.0)
        t = jnp.where(valid, t, 0.0)

    if r_block % 8 == 0:
        # Fold whole (8, 128) vreg tiles with pure VALU adds (no XLU work).
        def fold(v):
            return v.reshape(tb, r_block // 8, 8, lanes).sum(axis=1)
    else:
        # Single-chunk small-D path (r_block == rows, not a multiple of 8):
        # one cheap sublane reduce, only executed once per example.
        def fold(v):
            return v.sum(axis=1, keepdims=True)

    out_ref[0, :, :, :] += fold(p * t)           # intersection
    out_ref[1, :, :, :] += fold(p)               # sum(probs)
    out_ref[2, :, :, :] += fold(t)               # sum(targets)


def soft_dice_loss(logits, targets, *, smooth=1.0,
                   block_budget_bytes=8 * 1024 * 1024):
    """Pallas implementation of SoftDiceLoss.forward (smooth = 1)."""
    assert logits.shape == targets.shape, (logits.shape, targets.shape)
    n = logits.shape[0]
    d = int(math.prod(logits.shape[1:]))

    l_item = jnp.dtype(logits.dtype).itemsize
    t_item = jnp.dtype(targets.dtype).itemsize
    # Packed sublane multiple: 8 for f32, 16 for bf16, 32 for int8/fp8.
    sub_mult = max(8, 8 * (4 // l_item), 8 * (4 // t_item))

    rows = pl.cdiv(d, _LANES)
    d_pad = rows * _LANES

    logits2 = logits.reshape(n, d)
    targets2 = targets.reshape(n, d)
    if d_pad != d:
        # Only when D isn't a multiple of 128: pad by < 128 elements/example
        # so the lane-dense reshape is possible.  Pad values don't matter —
        # they are masked inside the kernel (mask granularity is exact).
        logits2 = jnp.pad(logits2, ((0, 0), (0, d_pad - d)))
        targets2 = jnp.pad(targets2, ((0, 0), (0, d_pad - d)))
    logits3 = logits2.reshape(n, rows, _LANES)
    targets3 = targets2.reshape(n, rows, _LANES)

    # Dtype-aware chunk sizing: ~block_budget_bytes of *both* input streams
    # per pipeline buffer (double-buffered by Pallas).
    bytes_per_row = _LANES * (l_item + t_item)
    max_rows = max(sub_mult, block_budget_bytes // bytes_per_row)

    if rows <= max_rows:
        # Small/medium D: one chunk covers the whole example; batch TB
        # examples per grid step to amortise per-step pipeline overhead.
        r_block = int(rows)
        num_chunks = 1
        per_ex_bytes = pl.cdiv(rows, 8) * 8 * bytes_per_row
        tb = int(min(n, 256, max(1, block_budget_bytes // per_ex_bytes)))
    else:
        # Large D: stream one example at a time in r_block-row chunks.
        r_block = int(max(sub_mult, (max_rows // sub_mult) * sub_mult))
        num_chunks = int(pl.cdiv(rows, r_block))
        tb = 1

    nb = int(pl.cdiv(n, tb))
    n_pad = nb * tb
    slab_rows = 8 if r_block % 8 == 0 else 1
    # Mask needed iff the kernel's covered index range exceeds the valid D
    # (ragged last chunk, ragged last row, or the <128-element pad).
    needs_mask = (num_chunks * r_block * _LANES) > d

    kernel = functools.partial(_soft_dice_kernel, d_valid=d,
                               needs_mask=needs_mask)

    # VMEM: 2 pipeline buffers of both inputs + the resident output slab,
    # plus headroom.  Stays well inside v7x's 64 MiB physical VMEM at the
    # default budget while raising v5e's 16 MiB scoped default.
    in_block_bytes = tb * r_block * _LANES * (l_item + t_item)
    out_block_bytes = 3 * tb * slab_rows * _LANES * 4
    vmem_limit = int(min(max(2 * (in_block_bytes + out_block_bytes) + (8 << 20),
                             24 << 20), 100 << 20))

    slabs = pl.pallas_call(
        kernel,
        out_shape=jax.ShapeDtypeStruct((3, n_pad, slab_rows, _LANES),
                                       jnp.float32),
        grid_spec=pltpu.PrefetchScalarGridSpec(
            num_scalar_prefetch=0,
            grid=(nb, num_chunks),
            in_specs=[
                pl.BlockSpec((tb, r_block, _LANES), lambda i, k: (i, k, 0)),
                pl.BlockSpec((tb, r_block, _LANES), lambda i, k: (i, k, 0)),
            ],
            out_specs=pl.BlockSpec((3, tb, slab_rows, _LANES),
                                   lambda i, k: (0, i, 0, 0)),
        ),
        compiler_params=pltpu.CompilerParams(
            dimension_semantics=("parallel", "arbitrary"),
            vmem_limit_bytes=vmem_limit,
        ),
    )(logits3, targets3)

    # Tiny finalization in plain JAX: (3, N, slab, 128) -> (3, N) -> dice.
    sums = jnp.sum(slabs[:, :n], axis=(2, 3))
    inter, s1, s2 = sums[0], sums[1], sums[2]
    score = 2.0 * (inter + smooth) / (s1 + s2 + smooth)
    return 1.0 - jnp.sum(score) / n


def _reference(logits, targets):
    smooth = 1.0
    n = logits.shape[0]
    probs = jax.nn.sigmoid(logits.astype(jnp.float32))
    m1 = probs.reshape(n, -1)
    m2 = targets.astype(jnp.float32).reshape(n, -1)
    inter = (m1 * m2).sum(1)
    score = 2.0 * (inter + smooth) / (m1.sum(1) + m2.sum(1) + smooth)
    return 1.0 - score.sum() / n


if __name__ == "__main__":
    key = jax.random.PRNGKey(0)
    k1, k2 = jax.random.split(key)

    # 1) Canonical small shape: batch=2, channels=4, spatial=16x16 (D=1024).
    logits = jax.random.normal(k1, (2, 4, 16, 16), dtype=jnp.float32)
    targets = (jax.random.uniform(k2, (2, 4, 16, 16)) > 0.5).astype(jnp.float32)
    loss = soft_dice_loss(logits, targets)
    jax.block_until_ready(loss)
    ref = _reference(logits, targets)
    assert jnp.allclose(loss, ref, atol=1e-5, rtol=1e-5), (loss, ref)

    # 2) D not a multiple of 128 -> exercises the in-kernel masking path.
    logits_b = jax.random.normal(k1, (2, 3, 10, 11), dtype=jnp.float32)
    targets_b = (jax.random.uniform(k2, (2, 3, 10, 11)) > 0.5).astype(jnp.float32)
    loss_b = soft_dice_loss(logits_b, targets_b)
    jax.block_until_ready(loss_b)
    ref_b = _reference(logits_b, targets_b)
    assert jnp.allclose(loss_b, ref_b, atol=1e-5, rtol=1e-5), (loss_b, ref_b)

    # 3) Force the multi-chunk streaming path with a tiny block budget.
    logits_c = jax.random.normal(k1, (2, 4, 32, 32), dtype=jnp.float32)
    targets_c = (jax.random.uniform(k2, (2, 4, 32, 32)) > 0.5).astype(jnp.float32)
    loss_c = soft_dice_loss(logits_c, targets_c, block_budget_bytes=8 * 1024)
    jax.block_until_ready(loss_c)
    ref_c = _reference(logits_c, targets_c)
    assert jnp.allclose(loss_c, ref_c, atol=1e-5, rtol=1e-5), (loss_c, ref_c)

    # 4) Narrow input dtypes (bf16) -> dtype-aware block sizing, f32 accum.
    logits_d = logits.astype(jnp.bfloat16)
    targets_d = targets.astype(jnp.bfloat16)
    loss_d = soft_dice_loss(logits_d, targets_d)
    jax.block_until_ready(loss_d)
    ref_d = _reference(logits_d, targets_d)
    assert jnp.allclose(loss_d, ref_d, atol=1e-4, rtol=1e-4), (loss_d, ref_d)

    print("KERNEL_OK")
</pallas_src>

<mosaic_0001>
module attributes {stable_mosaic.version = 11 : i64} {
  func.func @_soft_dice_kernel(%arg0: i32, %arg1: i32, %arg2: memref<2x8x128xf32, #tpu.memory_space<vmem>>, %arg3: memref<2x8x128xf32, #tpu.memory_space<vmem>>, %arg4: memref<3x2x8x128xf32, #tpu.memory_space<vmem>>) attributes {dimension_semantics = [#tpu.dimension_semantics<parallel>, #tpu.dimension_semantics<arbitrary>], iteration_bounds = array<i64: 1, 1>, scalar_prefetch = 0 : i64, scratch_operands = 0 : i64, tpu.core_type = #tpu.core_type<tc>, window_params = [{transform_indices = @transform_0, window_bounds = array<i64: 2, 8, 128>}, {transform_indices = @transform_1, window_bounds = array<i64: 2, 8, 128>}, {transform_indices = @transform_2, window_bounds = array<i64: 3, 2, 8, 128>}]} {
    %c0_i32 = arith.constant 0 : i32
    %0 = arith.cmpi eq, %arg1, %c0_i32 : i32
    %1 = arith.extui %0 : i1 to i32
    %c0_i32_0 = arith.constant 0 : i32
    %2 = arith.cmpi ne, %1, %c0_i32_0 : i32
    scf.if %2 {
      %cst_31 = arith.constant 0.000000e+00 : f32
      %35 = vector.broadcast %cst_31 : f32 to vector<3x2x8x128xf32>
      %c0_32 = arith.constant 0 : index
      %c0_33 = arith.constant 0 : index
      %c0_34 = arith.constant 0 : index
      %c0_35 = arith.constant 0 : index
      %36 = vector.load %arg4[%c0_32, %c0_33, %c0_34, %c0_35] : memref<3x2x8x128xf32, #tpu.memory_space<vmem>>, vector<3x2x8x128xf32>
      tpu.vector_store %arg4[%c0_32, %c0_33, %c0_34, %c0_35], %35 {strides = array<i32>} : memref<3x2x8x128xf32, #tpu.memory_space<vmem>>, vector<3x2x8x128xf32>,
    } else {
    }
    %c0 = arith.constant 0 : index
    %c0_1 = arith.constant 0 : index
    %c0_2 = arith.constant 0 : index
    %3 = vector.load %arg2[%c0, %c0_1, %c0_2] : memref<2x8x128xf32, #tpu.memory_space<vmem>>, vector<2x8x128xf32>
    %c0_3 = arith.constant 0 : index
    %c0_4 = arith.constant 0 : index
    %c0_5 = arith.constant 0 : index
    %4 = vector.load %arg3[%c0_3, %c0_4, %c0_5] : memref<2x8x128xf32, #tpu.memory_space<vmem>>, vector<2x8x128xf32>
    %5 = arith.negf %3 : vector<2x8x128xf32>
    %6 = math.exp %5 : vector<2x8x128xf32>
    %cst = arith.constant 1.000000e+00 : f32
    %7 = vector.broadcast %cst : f32 to vector<2x8x128xf32>
    %8 = arith.addf %7, %6 : vector<2x8x128xf32>
    %9 = arith.divf %7, %8 : vector<2x8x128xf32>
    %c0_6 = arith.constant 0 : index
    %c0_7 = arith.constant 0 : index
    %c0_8 = arith.constant 0 : index
    %c0_9 = arith.constant 0 : index
    %10 = vector.load %arg4[%c0_6, %c0_7, %c0_8, %c0_9] : memref<3x2x8x128xf32, #tpu.memory_space<vmem>>, vector<1x2x8x128xf32>
    %11 = vector.shape_cast %10 : vector<1x2x8x128xf32> to vector<2x8x128xf32>
    %12 = arith.mulf %9, %4 : vector<2x8x128xf32>
    %13 = vector.shape_cast %12 : vector<2x8x128xf32> to vector<2x1x8x128xf32>
    %cst_10 = arith.constant dense<0.000000e+00> : vector<2x8x128xf32>
    %14 = vector.multi_reduction <add>, %13, %cst_10 [1] : vector<2x1x8x128xf32> to vector<2x8x128xf32>
    %15 = arith.addf %11, %14 : vector<2x8x128xf32>
    %c0_11 = arith.constant 0 : index
    %c0_12 = arith.constant 0 : index
    %c0_13 = arith.constant 0 : index
    %c0_14 = arith.constant 0 : index
    %16 = vector.load %arg4[%c0_11, %c0_12, %c0_13, %c0_14] : memref<3x2x8x128xf32, #tpu.memory_space<vmem>>, vector<1x2x8x128xf32>
    %17 = vector.shape_cast %16 : vector<1x2x8x128xf32> to vector<2x8x128xf32>
    %18 = vector.shape_cast %15 : vector<2x8x128xf32> to vector<1x2x8x128xf32>
    tpu.vector_store %arg4[%c0_11, %c0_12, %c0_13, %c0_14], %18 {strides = array<i32>} : memref<3x2x8x128xf32, #tpu.memory_space<vmem>>, vector<1x2x8x128xf32>,
    %c1 = arith.constant 1 : index
    %c0_15 = arith.constant 0 : index
    %c0_16 = arith.constant 0 : index
    %c0_17 = arith.constant 0 : index
    %19 = vector.load %arg4[%c1, %c0_15, %c0_16, %c0_17] : memref<3x2x8x128xf32, #tpu.memory_space<vmem>>, vector<1x2x8x128xf32>
    %20 = vector.shape_cast %19 : vector<1x2x8x128xf32> to vector<2x8x128xf32>
    %21 = vector.shape_cast %9 : vector<2x8x128xf32> to vector<2x1x8x128xf32>
    %cst_18 = arith.constant dense<0.000000e+00> : vector<2x8x128xf32>
    %22 = vector.multi_reduction <add>, %21, %cst_18 [1] : vector<2x1x8x128xf32> to vector<2x8x128xf32>
    %23 = arith.addf %20, %22 : vector<2x8x128xf32>
    %c1_19 = arith.constant 1 : index
    %c0_20 = arith.constant 0 : index
    %c0_21 = arith.constant 0 : index
    %c0_22 = arith.constant 0 : index
    %24 = vector.load %arg4[%c1_19, %c0_20, %c0_21, %c0_22] : memref<3x2x8x128xf32, #tpu.memory_space<vmem>>, vector<1x2x8x128xf32>
    %25 = vector.shape_cast %24 : vector<1x2x8x128xf32> to vector<2x8x128xf32>
    %26 = vector.shape_cast %23 : vector<2x8x128xf32> to vector<1x2x8x128xf32>
    tpu.vector_store %arg4[%c1_19, %c0_20, %c0_21, %c0_22], %26 {strides = array<i32>} : memref<3x2x8x128xf32, #tpu.memory_space<vmem>>, vector<1x2x8x128xf32>,
    %c2 = arith.constant 2 : index
    %c0_23 = arith.constant 0 : index
    %c0_24 = arith.constant 0 : index
    %c0_25 = arith.constant 0 : index
    %27 = vector.load %arg4[%c2, %c0_23, %c0_24, %c0_25] : memref<3x2x8x128xf32, #tpu.memory_space<vmem>>, vector<1x2x8x128xf32>
    %28 = vector.shape_cast %27 : vector<1x2x8x128xf32> to vector<2x8x128xf32>
    %29 = vector.shape_cast %4 : vector<2x8x128xf32> to vector<2x1x8x128xf32>
    %cst_26 = arith.constant dense<0.000000e+00> : vector<2x8x128xf32>
    %30 = vector.multi_reduction <add>, %29, %cst_26 [1] : vector<2x1x8x128xf32> to vector<2x8x128xf32>
    %31 = arith.addf %28, %30 : vector<2x8x128xf32>
    %c2_27 = arith.constant 2 : index
    %c0_28 = arith.constant 0 : index
    %c0_29 = arith.constant 0 : index
    %c0_30 = arith.constant 0 : index
    %32 = vector.load %arg4[%c2_27, %c0_28, %c0_29, %c0_30] : memref<3x2x8x128xf32, #tpu.memory_space<vmem>>, vector<1x2x8x128xf32>
    %33 = vector.shape_cast %32 : vector<1x2x8x128xf32> to vector<2x8x128xf32>
    %34 = vector.shape_cast %31 : vector<2x8x128xf32> to vector<1x2x8x128xf32>
    tpu.vector_store %arg4[%c2_27, %c0_28, %c0_29, %c0_30], %34 {strides = array<i32>} : memref<3x2x8x128xf32, #tpu.memory_space<vmem>>, vector<1x2x8x128xf32>,
    return
  }
  func.func @transform_0(%arg0: i32, %arg1: i32) -> (i32, i32, i32) {
    %c0_i32 = arith.constant 0 : i32
    %c0_i32_0 = arith.constant 0 : i32
    return %arg0, %arg1, %c0_i32 : i32, i32, i32
  }
  func.func @transform_1(%arg0: i32, %arg1: i32) -> (i32, i32, i32) {
    %c0_i32 = arith.constant 0 : i32
    %c0_i32_0 = arith.constant 0 : i32
    return %arg0, %arg1, %c0_i32 : i32, i32, i32
  }
  func.func @transform_2(%arg0: i32, %arg1: i32) -> (i32, i32, i32, i32) {
    %c0_i32 = arith.constant 0 : i32
    %c0_i32_0 = arith.constant 0 : i32
    %c0_i32_1 = arith.constant 0 : i32
    %c0_i32_2 = arith.constant 0 : i32
    return %c0_i32, %arg0, %c0_i32_0, %c0_i32_1 : i32, i32, i32, i32
  }
}

</mosaic_0001>

<bundles_post_ra>
// kernel: tpu_custom_call.1
= control target key start
LH: loop header
LB: loop body
LE: loop exit
PB: predicated region body
PF: predicated region fallthrough
CT: control target
= control target key end

     0   :  { %7 = vsyncpa [#allocation3], 0  ;;  %s232_s0 = inlined_call_operand.hbm [shape: f32[2,8,128], index: 0, kind: input, shape index: {}]   ;;  %s233_s1 = inlined_call_operand.hbm [shape: f32[2,8,128], index: 1, kind: input, shape index: {}]   ;;  %s234_s2 = inlined_call_operand.hbm [shape: f32[3,2,8,128], index: 2, kind: output, shape index: {}]  }
   0x1   :  { %8 = vsyncpa [#allocation6], 0 }
   0x2   :  { %9 = vsyncpa [#allocation4], 0  ;;  %s194_s9 = smov [#allocation2]  }
   0x3   :  { %s15_s10 = sshll.u32 %s194_s9, 4  ;;  %s16_s10 = int_to_ptr.vmem [resolvable:$true] %s15_s10 }
   0x4   :  { %s136_s11 = scalar_lea.vmem %s16_s10, 256  ;;  %p141_p1 = scmp.lt.s32.totalorder %s16_s10, %s16_s10 }
   0x5   :  { %p137_p0 = scmp.ne.s32.totalorder %s16_s10, %s136_s11  ;;  %p142_p2 = scmp.lt.s32.totalorder %s136_s11, %s136_s11 }
   0x7   :  { %p143_p3 = por %p142_p2, %p141_p1 }
   0x9   :  { %p144_p4 = pnand %p143_p3, %p137_p0 }
   0xb   :  { %147 = shalt.err (!%p144_p4)
}
   0xc   :  { %s195_s12 = smov 128   ;;  %s196_s13 = smov 8  }
   0xd   :  { %21 = dma.hbm_to_vmem [thread:$0]  %s232_s0, 256, %s16_s10, [#allocation3], %s195_s12, %s195_s12, %s196_s13  }
   0xe   :  { %s197_s16 = smov [#allocation5]  }
   0xf   :  { %s27_s17 = sshll.u32 %s197_s16, 4  ;;  %s28_s17 = int_to_ptr.vmem [resolvable:$true] %s27_s17 }
  0x10   :  { %s156_s18 = scalar_lea.vmem %s28_s17, 256  ;;  %p161_p6 = scmp.lt.s32.totalorder %s28_s17, %s28_s17 }
  0x11   :  { %p157_p5 = scmp.ne.s32.totalorder %s28_s17, %s156_s18  ;;  %p162_p7 = scmp.lt.s32.totalorder %s156_s18, %s156_s18 }
  0x13   :  { %p163_p8 = por %p162_p7, %p161_p6 }
  0x15   :  { %p164_p9 = pnand %p163_p8, %p157_p5 }
  0x17   :  { %167 = shalt.err (!%p164_p9)
}
  0x18   :  { %33 = dma.hbm_to_vmem [thread:$0]  %s233_s1, 256, %s28_s17, [#allocation6], %s195_s12, %s195_s12, %s196_s13  }
  0x19   :  { %188 = dma.done.wait [#allocation3], 256  }
  0x1a   :  { %189 = vsyncadd [#allocation3], 4294967040 }
  0x1b   :  { %190 = dma.done.wait [#allocation6], 256  }
  0x1c   :  { %191 = vsyncadd [#allocation6], 4294967040  ;;  %v50_v0 = vld [vmem:[#allocation2] sm:$0xff]  ;;  %v52_v1 = vld [vmem:[#allocation5] sm:$0xff]  ;;  %s198_s0 = smov [#allocation7]  }
  0x1d   :  { %v51_v2 = vld [vmem:[#allocation2 + $0x8] sm:$0xff]  ;;  %v112_v3 = vmul.f32 -1.442695, %v50_v0  ;;  %v53_v4 = vld [vmem:[#allocation5 + $0x8] sm:$0xff]  ;;  %92 = vst [vmem:[#allocation7 + $0x20] sm:$0xff] %v52_v1  ;;  %s99_s1 = sshll.u32 %s198_s0, 4  ;;  %s100_s1 = int_to_ptr.vmem [resolvable:$true] %s99_s1 }
  0x1e   :  { %v113_v5 = vmul.f32 -1.442695, %v51_v2  ;;  %93 = vst [vmem:[#allocation7 + $0x28] sm:$0xff] %v53_v4  ;;  %s168_s21 = scalar_lea.vmem %s100_s1, 768  ;;  %p173_p11 = scmp.lt.s32.totalorder %s100_s1, %s100_s1 }
  0x1f   :  { %120 = vpow2.f32 %v112_v3  ;;  %p169_p10 = scmp.ne.s32.totalorder %s100_s1, %s168_s21  ;;  %p174_p12 = scmp.lt.s32.totalorder %s168_s21, %s168_s21 }
  0x20   :  { %122 = vpow2.f32 %v113_v5 }
  0x21   :  { %p175_p13 = por %p174_p12, %p173_p11 }
  0x23   :  { %p176_p0 = pnand %p175_p13, %p169_p10 }
  0x2c   :  { %v121_v6 = vpop.eup %120 }
  0x2d   :  { %v123_v7 = vpop.eup %122  ;;  %v60_v8 = vadd.f32 1.0, %v121_v6 }
  0x2e   :  { %v61_v9 = vadd.f32 1.0, %v123_v7 }
  0x2f   :  { %124 = vrcp.f32 %v60_v8 }
  0x30   :  { %126 = vrcp.f32 %v61_v9 }
  0x3c   :  { %v125_v10 = vpop.eup %124 }
  0x3d   :  { %v127_v11 = vpop.eup %126  ;;  %v68_v12 = vmul.f32 %v125_v10, %v52_v1  ;;  %83 = vst [vmem:[#allocation7 + $0x10] sm:$0xff] %v125_v10 }
  0x3e   :  { %v69_v13 = vmul.f32 %v127_v11, %v53_v4  ;;  %84 = vst [vmem:[#allocation7 + $0x18] sm:$0xff] %v127_v11 }
  0x3f   :  { %74 = vst [vmem:[#allocation7] sm:$0xff] %v68_v12 }
  0x40   :  { %75 = vst [vmem:[#allocation7 + $0x8] sm:$0xff] %v69_v13 }
  0x41   :  { %179 = shalt.err (!%p176_p0)
}
  0x42   :  { %105 = dma.vmem_to_hbm [thread:$0]  %s100_s1, 768, %s234_s2, [#allocation4], %s195_s12, %s195_s12, %s196_s13  }
  0x43   :  { %192 = dma.done.wait [#allocation4], 768  }
  0x44   :  { %193 = vsyncadd [#allocation4], 4294966528 }
  0x45   :  { %109 = vsyncpa [#allocation3], 1 }
  0x46   :  { %110 = vsyncpa [#allocation6], 1 }
  0x47   :  { %111 = vsyncpa [#allocation4], 1 }

</bundles_post_ra>
